<compile_context>
chip_gen: v6e
topology: v6e:2x2x1
jax: 0.10.0
libtpu: 0.0.40
codegen_flags: <defaults>
</compile_context>

<pallas_src>
import functools

import jax
import jax.numpy as jnp
from jax.experimental import pallas as pl
from jax.experimental.pallas import tpu as pltpu

HIDDEN1 = 512
HIDDEN2 = 256
LANE = 128   # TPU lane width
TM = 128     # batch-tile rows per grid step


def _round_up(n, m):
    return (n + m - 1) // m * m


def mlp_kernel(x_ref, w1_ref, b1_ref, w2_ref, b2_ref, w3_ref, b3_ref,
               o_ref, h1_ref, h2_ref):
    # fc1 + ReLU  (bf16 operands, f32 accumulation on the MXU), staged to VMEM scratch
    h1 = jnp.dot(x_ref[...], w1_ref[...], preferred_element_type=jnp.float32)
    h1_ref[...] = jnp.maximum(h1 + b1_ref[...], 0.0).astype(h1_ref.dtype)
    # fc2 + ReLU
    h2 = jnp.dot(h1_ref[...], w2_ref[...], preferred_element_type=jnp.float32)
    h2_ref[...] = jnp.maximum(h2 + b2_ref[...], 0.0).astype(h2_ref.dtype)
    # fc3 (no activation), lane-dense padded output slab
    out = jnp.dot(h2_ref[...], w3_ref[...], preferred_element_type=jnp.float32)
    o_ref[...] = (out + b3_ref[...]).astype(o_ref.dtype)


@jax.jit
def mlp_forward(x, w1, b1, w2, b2, w3, b3):
    B, in_dim = x.shape
    out_dim = w3.shape[1]

    k_pad = _round_up(in_dim, LANE)      # lane-dense x / fc1 contraction dim
    out_pad = _round_up(out_dim, LANE)   # lane-dense output store
    b_pad = _round_up(B, TM)             # whole batch tiles

    # Zero-pad (mathematically identical) and cast matmul operands to bf16.
    x_p = jnp.zeros((b_pad, k_pad), jnp.bfloat16).at[:B, :in_dim].set(
        x.astype(jnp.bfloat16))
    w1_p = jnp.zeros((k_pad, HIDDEN1), jnp.bfloat16).at[:in_dim, :].set(
        w1.astype(jnp.bfloat16))
    w2_b = w2.astype(jnp.bfloat16)
    w3_p = jnp.zeros((HIDDEN2, out_pad), jnp.bfloat16).at[:, :out_dim].set(
        w3.astype(jnp.bfloat16))
    b3_p = jnp.zeros((1, out_pad), jnp.float32).at[:, :out_dim].set(b3)

    def resident(shape):
        # Whole array in VMEM, same block for every batch tile -> not re-DMA'd per tile.
        return pl.BlockSpec(shape, lambda i: tuple(0 for _ in shape))

    out = pl.pallas_call(
        mlp_kernel,
        out_shape=jax.ShapeDtypeStruct((b_pad, out_pad), jnp.float32),
        grid_spec=pltpu.PrefetchScalarGridSpec(
            num_scalar_prefetch=0,
            grid=(b_pad // TM,),
            in_specs=[
                pl.BlockSpec((TM, k_pad), lambda i: (i, 0)),   # x batch tile
                resident((k_pad, HIDDEN1)), resident((1, HIDDEN1)),
                resident((HIDDEN1, HIDDEN2)), resident((1, HIDDEN2)),
                resident((HIDDEN2, out_pad)), resident((1, out_pad)),
            ],
            out_specs=pl.BlockSpec((TM, out_pad), lambda i: (i, 0)),
            scratch_shapes=[
                pltpu.VMEM((TM, HIDDEN1), jnp.bfloat16),   # h1 staging
                pltpu.VMEM((TM, HIDDEN2), jnp.bfloat16),   # h2 staging
            ],
        ),
        compiler_params=pltpu.CompilerParams(
            dimension_semantics=("parallel",),   # shard batch tiles across TCs on v7x
            vmem_limit_bytes=8 << 20,            # footprint ~1.3 MiB; leave headroom
        ),
    )(x_p, w1_p, b1, w2_b, b2, w3_p, b3_p)

    return out[:B, :out_dim]


def init_linear(key, in_dim, out_dim):
    # Deterministic init mirroring nn.Linear's U(-1/sqrt(in), 1/sqrt(in)).
    kw, kb = jax.random.split(key)
    bound = 1.0 / jnp.sqrt(jnp.float32(in_dim))
    w = jax.random.uniform(kw, (in_dim, out_dim), jnp.float32, -bound, bound)
    b = jax.random.uniform(kb, (1, out_dim), jnp.float32, -bound, bound)
    return w, b


if __name__ == "__main__":
    key = jax.random.PRNGKey(0)
    k_x, k1, k2, k3 = jax.random.split(key, 4)

    batch = 64        # DataLoader batch size used by the original module
    input_dim = 8     # feature columns of the stock dataframe
    output_dim = 4    # Open, High, Low, Close

    x = jax.random.normal(k_x, (batch, input_dim), jnp.float32)
    w1, b1 = init_linear(k1, input_dim, HIDDEN1)
    w2, b2 = init_linear(k2, HIDDEN1, HIDDEN2)
    w3, b3 = init_linear(k3, HIDDEN2, output_dim)

    out = jax.block_until_ready(mlp_forward(x, w1, b1, w2, b2, w3, b3))
    assert out.shape == (batch, output_dim)

    # Reference on the identical bf16-weight / f32-accumulate path (tight check).
    xb, w1b, w2b, w3b = (a.astype(jnp.bfloat16) for a in (x, w1, w2, w3))
    h1 = jnp.maximum(jnp.dot(xb, w1b, preferred_element_type=jnp.float32) + b1,
                     0.0).astype(jnp.bfloat16)
    h2 = jnp.maximum(jnp.dot(h1, w2b, preferred_element_type=jnp.float32) + b2,
                     0.0).astype(jnp.bfloat16)
    ref_bf16 = jnp.dot(h2, w3b, preferred_element_type=jnp.float32) + b3
    assert jnp.allclose(out, ref_bf16, atol=5e-3, rtol=5e-3)

    # Loose sanity check against the full f32 reference (bf16 quantization bound).
    ref_f32 = jnp.maximum(x @ w1 + b1, 0.0)
    ref_f32 = jnp.maximum(ref_f32 @ w2 + b2, 0.0)
    ref_f32 = ref_f32 @ w3 + b3
    assert jnp.allclose(out, ref_f32, atol=5e-2, rtol=5e-2)

    print("KERNEL_OK")
</pallas_src>

<mosaic_0001>
module attributes {stable_mosaic.version = 11 : i64} {
  func.func @mlp_kernel(%arg0: i32, %arg1: memref<128x128xbf16, #tpu.memory_space<vmem>>, %arg2: memref<128x512xbf16, #tpu.memory_space<vmem>>, %arg3: memref<1x512xf32, #tpu.memory_space<vmem>>, %arg4: memref<512x256xbf16, #tpu.memory_space<vmem>>, %arg5: memref<1x256xf32, #tpu.memory_space<vmem>>, %arg6: memref<256x128xbf16, #tpu.memory_space<vmem>>, %arg7: memref<1x128xf32, #tpu.memory_space<vmem>>, %arg8: memref<128x128xf32, #tpu.memory_space<vmem>>, %arg9: memref<128x512xbf16, #tpu.memory_space<vmem>>, %arg10: memref<128x256xbf16, #tpu.memory_space<vmem>>) attributes {dimension_semantics = [#tpu.dimension_semantics<parallel>], iteration_bounds = array<i64: 1>, scalar_prefetch = 0 : i64, scratch_operands = 2 : i64, tpu.core_type = #tpu.core_type<tc>, window_params = [{transform_indices = @transform_0, window_bounds = array<i64: 128, 128>}, {pipeline_mode = #tpu.pipeline_mode<synchronous>, transform_indices = @transform_1, window_bounds = array<i64: 128, 512>}, {pipeline_mode = #tpu.pipeline_mode<synchronous>, transform_indices = @transform_2, window_bounds = array<i64: 1, 512>}, {pipeline_mode = #tpu.pipeline_mode<synchronous>, transform_indices = @transform_3, window_bounds = array<i64: 512, 256>}, {pipeline_mode = #tpu.pipeline_mode<synchronous>, transform_indices = @transform_4, window_bounds = array<i64: 1, 256>}, {pipeline_mode = #tpu.pipeline_mode<synchronous>, transform_indices = @transform_5, window_bounds = array<i64: 256, 128>}, {pipeline_mode = #tpu.pipeline_mode<synchronous>, transform_indices = @transform_6, window_bounds = array<i64: 1, 128>}, {transform_indices = @transform_7, window_bounds = array<i64: 128, 128>}]} {
    %c0 = arith.constant 0 : index
    %c0_0 = arith.constant 0 : index
    %0 = vector.load %arg1[%c0, %c0_0] : memref<128x128xbf16, #tpu.memory_space<vmem>>, vector<128x128xbf16>
    %c0_1 = arith.constant 0 : index
    %c0_2 = arith.constant 0 : index
    %1 = vector.load %arg2[%c0_1, %c0_2] : memref<128x512xbf16, #tpu.memory_space<vmem>>, vector<128x512xbf16>
    %cst = arith.constant dense<0.000000e+00> : vector<128x512xf32>
    %2 = tpu.matmul %0, %1, %cst {dimension_numbers = #tpu.dot_dimension_numbers<[1], [0], [0], [1], [0, 0, 1, 1], [], []>} : vector<128x128xbf16>, vector<128x512xbf16>, vector<128x512xf32> -> vector<128x512xf32>
    %c0_3 = arith.constant 0 : index
    %c0_4 = arith.constant 0 : index
    %3 = vector.load %arg3[%c0_3, %c0_4] : memref<1x512xf32, #tpu.memory_space<vmem>>, vector<1x512xf32>
    %4 = vector.broadcast %3 : vector<1x512xf32> to vector<128x512xf32>
    %5 = arith.addf %2, %4 : vector<128x512xf32>
    %cst_5 = arith.constant 0.000000e+00 : f32
    %6 = vector.broadcast %cst_5 : f32 to vector<128x512xf32>
    %7 = arith.maximumf %5, %6 : vector<128x512xf32>
    %8 = arith.truncf %7 : vector<128x512xf32> to vector<128x512xbf16>
    %c0_6 = arith.constant 0 : index
    %c0_7 = arith.constant 0 : index
    %9 = vector.load %arg9[%c0_6, %c0_7] : memref<128x512xbf16, #tpu.memory_space<vmem>>, vector<128x512xbf16>
    tpu.vector_store %arg9[%c0_6, %c0_7], %8 {strides = array<i32>} : memref<128x512xbf16, #tpu.memory_space<vmem>>, vector<128x512xbf16>,
    %c0_8 = arith.constant 0 : index
    %c0_9 = arith.constant 0 : index
    %10 = vector.load %arg9[%c0_8, %c0_9] : memref<128x512xbf16, #tpu.memory_space<vmem>>, vector<128x512xbf16>
    %c0_10 = arith.constant 0 : index
    %c0_11 = arith.constant 0 : index
    %11 = vector.load %arg4[%c0_10, %c0_11] : memref<512x256xbf16, #tpu.memory_space<vmem>>, vector<512x256xbf16>
    %cst_12 = arith.constant dense<0.000000e+00> : vector<128x256xf32>
    %12 = tpu.matmul %10, %11, %cst_12 {dimension_numbers = #tpu.dot_dimension_numbers<[1], [0], [0], [1], [0, 0, 1, 1], [], []>} : vector<128x512xbf16>, vector<512x256xbf16>, vector<128x256xf32> -> vector<128x256xf32>
    %c0_13 = arith.constant 0 : index
    %c0_14 = arith.constant 0 : index
    %13 = vector.load %arg5[%c0_13, %c0_14] : memref<1x256xf32, #tpu.memory_space<vmem>>, vector<1x256xf32>
    %14 = vector.broadcast %13 : vector<1x256xf32> to vector<128x256xf32>
    %15 = arith.addf %12, %14 : vector<128x256xf32>
    %cst_15 = arith.constant 0.000000e+00 : f32
    %16 = vector.broadcast %cst_15 : f32 to vector<128x256xf32>
    %17 = arith.maximumf %15, %16 : vector<128x256xf32>
    %18 = arith.truncf %17 : vector<128x256xf32> to vector<128x256xbf16>
    %c0_16 = arith.constant 0 : index
    %c0_17 = arith.constant 0 : index
    %19 = vector.load %arg10[%c0_16, %c0_17] : memref<128x256xbf16, #tpu.memory_space<vmem>>, vector<128x256xbf16>
    tpu.vector_store %arg10[%c0_16, %c0_17], %18 {strides = array<i32>} : memref<128x256xbf16, #tpu.memory_space<vmem>>, vector<128x256xbf16>,
    %c0_18 = arith.constant 0 : index
    %c0_19 = arith.constant 0 : index
    %20 = vector.load %arg10[%c0_18, %c0_19] : memref<128x256xbf16, #tpu.memory_space<vmem>>, vector<128x256xbf16>
    %c0_20 = arith.constant 0 : index
    %c0_21 = arith.constant 0 : index
    %21 = vector.load %arg6[%c0_20, %c0_21] : memref<256x128xbf16, #tpu.memory_space<vmem>>, vector<256x128xbf16>
    %cst_22 = arith.constant dense<0.000000e+00> : vector<128x128xf32>
    %22 = tpu.matmul %20, %21, %cst_22 {dimension_numbers = #tpu.dot_dimension_numbers<[1], [0], [0], [1], [0, 0, 1, 1], [], []>} : vector<128x256xbf16>, vector<256x128xbf16>, vector<128x128xf32> -> vector<128x128xf32>
    %c0_23 = arith.constant 0 : index
    %c0_24 = arith.constant 0 : index
    %23 = vector.load %arg7[%c0_23, %c0_24] : memref<1x128xf32, #tpu.memory_space<vmem>>, vector<1x128xf32>
    %24 = vector.broadcast %23 : vector<1x128xf32> to vector<128x128xf32>
    %25 = arith.addf %22, %24 : vector<128x128xf32>
    %c0_25 = arith.constant 0 : index
    %c0_26 = arith.constant 0 : index
    %26 = vector.load %arg8[%c0_25, %c0_26] : memref<128x128xf32, #tpu.memory_space<vmem>>, vector<128x128xf32>
    tpu.vector_store %arg8[%c0_25, %c0_26], %25 {strides = array<i32>} : memref<128x128xf32, #tpu.memory_space<vmem>>, vector<128x128xf32>,
    return
  }
  func.func @transform_0(%arg0: i32) -> (i32, i32) {
    %c0_i32 = arith.constant 0 : i32
    %c0_i32_0 = arith.constant 0 : i32
    return %arg0, %c0_i32 : i32, i32
  }
  func.func @transform_1(%arg0: i32) -> (i32, i32) {
    %c0_i32 = arith.constant 0 : i32
    %c0_i32_0 = arith.constant 0 : i32
    %c0_i32_1 = arith.constant 0 : i32
    return %c0_i32, %c0_i32_0 : i32, i32
  }
  func.func @transform_2(%arg0: i32) -> (i32, i32) {
    %c0_i32 = arith.constant 0 : i32
    %c0_i32_0 = arith.constant 0 : i32
    %c0_i32_1 = arith.constant 0 : i32
    return %c0_i32, %c0_i32_0 : i32, i32
  }
  func.func @transform_3(%arg0: i32) -> (i32, i32) {
    %c0_i32 = arith.constant 0 : i32
    %c0_i32_0 = arith.constant 0 : i32
    %c0_i32_1 = arith.constant 0 : i32
    return %c0_i32, %c0_i32_0 : i32, i32
  }
  func.func @transform_4(%arg0: i32) -> (i32, i32) {
    %c0_i32 = arith.constant 0 : i32
    %c0_i32_0 = arith.constant 0 : i32
    %c0_i32_1 = arith.constant 0 : i32
    return %c0_i32, %c0_i32_0 : i32, i32
  }
  func.func @transform_5(%arg0: i32) -> (i32, i32) {
    %c0_i32 = arith.constant 0 : i32
    %c0_i32_0 = arith.constant 0 : i32
    %c0_i32_1 = arith.constant 0 : i32
    return %c0_i32, %c0_i32_0 : i32, i32
  }
  func.func @transform_6(%arg0: i32) -> (i32, i32) {
    %c0_i32 = arith.constant 0 : i32
    %c0_i32_0 = arith.constant 0 : i32
    %c0_i32_1 = arith.constant 0 : i32
    return %c0_i32, %c0_i32_0 : i32, i32
  }
  func.func @transform_7(%arg0: i32) -> (i32, i32) {
    %c0_i32 = arith.constant 0 : i32
    %c0_i32_0 = arith.constant 0 : i32
    return %arg0, %c0_i32 : i32, i32
  }
}

</mosaic_0001>

<bundles_post_ra>
// kernel: mlp_forward.1
= control target key start
LH: loop header
LB: loop body
LE: loop exit
PB: predicated region body
PF: predicated region fallthrough
CT: control target
= control target key end

     0   :  { %v2687_v1 = vmov 0   ;;  %s3301_s1 = inlined_call_operand.vmem [shape: bf16[128,512], index: 1, kind: input, shape index: {}]   ;;  %s3302_s0 = inlined_call_operand.vmem [shape: bf16[128,128], index: 0, kind: input, shape index: {}]   ;;  %s3303_s3 = inlined_call_operand.vmem [shape: bf16[512,256], index: 3, kind: input, shape index: {}]   ;;  %s3304_s5 = inlined_call_operand.vmem [shape: bf16[256,128], index: 5, kind: input, shape index: {}]   ;;  %s3305_s2 = inlined_call_operand.vmem [shape: f32[1,512], index: 2, kind: input, shape index: {}]   ;;  %s3306_s4 = inlined_call_operand.vmem [shape: f32[1,256], index: 4, kind: input, shape index: {}]   ;;  %s3307_s6 = inlined_call_operand.vmem [shape: f32[1,128], index: 6, kind: input, shape index: {}]   ;;  %s3308_s7 = inlined_call_operand.vmem [shape: f32[128,128], index: 7, kind: output, shape index: {}]  }
   0x1   :  { %v2519_v0 = vld [vmem:[%s3301_s1 + $0xe4] ss:$16 sps:$4 sm:$0xff]   ;;  %337 = vmatprep.mubr.bf16.mxu0 %v2687_v1  ;;  %450 = vmatprep.mubr.bf16.mxu1 %v2687_v1  ;;  %v2521_v2 = vld [vmem:[%s3301_s1 + $0xec] ss:$16 sps:$4 sm:$0xff]   ;;  %v2523_v3 = vld [vmem:[%s3301_s1 + $0xe0] ss:$16 sps:$4 sm:$0xff]  }
   0x2   :  { %305 = vmatprep.subr.bf16.mxu0 %v2519_v0  ;;  %v2524_v4 = vld [vmem:[%s3301_s1 + $0xe8] ss:$16 sps:$4 sm:$0xff]   ;;  %418 = vmatprep.subr.bf16.mxu1 %v2521_v2  ;;  %v2525_v5 = vld [vmem:[%s3301_s1 + $0xc4] ss:$16 sps:$4 sm:$0xff]   ;;  %v2527_v6 = vld [vmem:[%s3301_s1 + $0xcc] ss:$16 sps:$4 sm:$0xff]  }
   0x3   :  { %306 = vmatpush1.bf16.msra.mxu0 %v2523_v3  ;;  %419 = vmatpush1.bf16.msra.mxu1 %v2524_v4  ;;  %v2529_v7 = vld [vmem:[%s3301_s1 + $0xc0] ss:$16 sps:$4 sm:$0xff]   ;;  %v2530_v8 = vld [vmem:[%s3301_s1 + $0xc8] ss:$16 sps:$4 sm:$0xff]   ;;  %v2531_v9 = vld [vmem:[%s3301_s1 + $0xa4] ss:$16 sps:$4 sm:$0xff]  }
   0x4   :  { %307 = vmatprep.subr.bf16.mxu0 %v2525_v5  ;;  %420 = vmatprep.subr.bf16.mxu1 %v2527_v6  ;;  %v2533_v10 = vld [vmem:[%s3301_s1 + $0xac] ss:$16 sps:$4 sm:$0xff]   ;;  %v2535_v11 = vld [vmem:[%s3301_s1 + $0xa0] ss:$16 sps:$4 sm:$0xff]   ;;  %v2536_v12 = vld [vmem:[%s3301_s1 + $0xa8] ss:$16 sps:$4 sm:$0xff]  }
   0x5   :  { %v2537_v13 = vld [vmem:[%s3301_s1 + $0x84] ss:$16 sps:$4 sm:$0xff]   ;;  %v2539_v14 = vld [vmem:[%s3301_s1 + $0x8c] ss:$16 sps:$4 sm:$0xff]   ;;  %v2541_v15 = vld [vmem:[%s3301_s1 + $0x80] ss:$16 sps:$4 sm:$0xff]  }
   0x6   :  { %v2542_v16 = vld [vmem:[%s3301_s1 + $0x88] ss:$16 sps:$4 sm:$0xff]   ;;  %v2543_v17 = vld [vmem:[%s3301_s1 + $0x64] ss:$16 sps:$4 sm:$0xff]   ;;  %v2545_v18 = vld [vmem:[%s3301_s1 + $0x6c] ss:$16 sps:$4 sm:$0xff]  }
   0x7   :  { %308 = vmatpush1.bf16.msra.mxu0 %v2529_v7  ;;  %421 = vmatpush1.bf16.msra.mxu1 %v2530_v8  ;;  %v2547_v19 = vld [vmem:[%s3301_s1 + $0x60] ss:$16 sps:$4 sm:$0xff]   ;;  %v2548_v20 = vld [vmem:[%s3301_s1 + $0x68] ss:$16 sps:$4 sm:$0xff]   ;;  %v2549_v21 = vld [vmem:[%s3301_s1 + $0x44] ss:$16 sps:$4 sm:$0xff]  }
   0x8   :  { %309 = vmatprep.subr.bf16.mxu0 %v2531_v9  ;;  %422 = vmatprep.subr.bf16.mxu1 %v2533_v10  ;;  %v2551_v22 = vld [vmem:[%s3301_s1 + $0x4c] ss:$16 sps:$4 sm:$0xff]   ;;  %v2553_v23 = vld [vmem:[%s3301_s1 + $0x40] ss:$16 sps:$4 sm:$0xff]   ;;  %v2554_v24 = vld [vmem:[%s3301_s1 + $0x48] ss:$16 sps:$4 sm:$0xff]  }
   0x9   :  { %v2555_v25 = vld [vmem:[%s3301_s1 + $0x24] ss:$16 sps:$4 sm:$0xff]   ;;  %v2557_v26 = vld [vmem:[%s3301_s1 + $0x2c] ss:$16 sps:$4 sm:$0xff]   ;;  %v2559_v27 = vld [vmem:[%s3301_s1 + $0x20] ss:$16 sps:$4 sm:$0xff]  }
   0xa   :  { %v2560_v28 = vld [vmem:[%s3301_s1 + $0x28] ss:$16 sps:$4 sm:$0xff]   ;;  %v2561_v29 = vld [vmem:[%s3301_s1 + $0x4] ss:$16 sps:$4 sm:$0xff]   ;;  %v2563_v30 = vld [vmem:[%s3301_s1 + $0xc] ss:$16 sps:$4 sm:$0xff]  }
   0xb   :  { %310 = vmatpush1.bf16.msra.mxu0 %v2535_v11  ;;  %423 = vmatpush1.bf16.msra.mxu1 %v2536_v12  ;;  %v2565_v31 = vld [vmem:[%s3301_s1] ss:$16 sps:$4 sm:$0xff]   ;;  %v2566_v32 = vld [vmem:[%s3301_s1 + $0x8] ss:$16 sps:$4 sm:$0xff]   ;;  %v2577_v33 = vld [vmem:[%s3303_s3 + $0x74] ss:$8 sps:$4 sm:$0xff]  }
   0xc   :  { %311 = vmatprep.subr.bf16.mxu0 %v2537_v13  ;;  %424 = vmatprep.subr.bf16.mxu1 %v2539_v14  ;;  %v2567_v34 = vld [vmem:[%s3302_s0] sm:$0xff]   ;;  %v2580_v35 = vld [vmem:[%s3303_s3 + $0x174] ss:$8 sps:$4 sm:$0xff]   ;;  %v2575_v36 = vld [vmem:[%s3303_s3 + $0x70] ss:$8 sps:$4 sm:$0xff]  }
   0xd   :  { %v2578_v37 = vld [vmem:[%s3303_s3 + $0x170] ss:$8 sps:$4 sm:$0xff]   ;;  %v2583_v38 = vld [vmem:[%s3303_s3 + $0x64] ss:$8 sps:$4 sm:$0xff]   ;;  %v2581_v40 = vld [vmem:[%s3303_s3 + $0x60] ss:$8 sps:$4 sm:$0xff]  }
   0xe   :  { %v2586_v39 = vld [vmem:[%s3303_s3 + $0x164] ss:$8 sps:$4 sm:$0xff]   ;;  %v2584_v41 = vld [vmem:[%s3303_s3 + $0x160] ss:$8 sps:$4 sm:$0xff]   ;;  %v2589_v42 = vld [vmem:[%s3303_s3 + $0x54] ss:$8 sps:$4 sm:$0xff]  }
   0xf   :  { %312 = vmatpush1.bf16.msra.mxu0 %v2541_v15  ;;  %425 = vmatpush1.bf16.msra.mxu1 %v2542_v16  ;;  %v2592_v43 = vld [vmem:[%s3303_s3 + $0x154] ss:$8 sps:$4 sm:$0xff]   ;;  %v2568_v44 = vld [vmem:[%s3302_s0 + $0x8] sm:$0xff]   ;;  %v2587_v45 = vld [vmem:[%s3303_s3 + $0x50] ss:$8 sps:$4 sm:$0xff]  }
  0x10   :  { %313 = vmatprep.subr.bf16.mxu0 %v2543_v17  ;;  %426 = vmatprep.subr.bf16.mxu1 %v2545_v18  ;;  %v2590_v46 = vld [vmem:[%s3303_s3 + $0x150] ss:$8 sps:$4 sm:$0xff]   ;;  %v2595_v47 = vld [vmem:[%s3303_s3 + $0x44] ss:$8 sps:$4 sm:$0xff]   ;;  %v2593_v49 = vld [vmem:[%s3303_s3 + $0x40] ss:$8 sps:$4 sm:$0xff]  }
  0x11   :  { %v2598_v48 = vld [vmem:[%s3303_s3 + $0x144] ss:$8 sps:$4 sm:$0xff]   ;;  %v2596_v50 = vld [vmem:[%s3303_s3 + $0x140] ss:$8 sps:$4 sm:$0xff]   ;;  %v2601_v51 = vld [vmem:[%s3303_s3 + $0x34] ss:$8 sps:$4 sm:$0xff]  }
  0x12   :  { %v2604_v52 = vld [vmem:[%s3303_s3 + $0x134] ss:$8 sps:$4 sm:$0xff]   ;;  %v2599_v54 = vld [vmem:[%s3303_s3 + $0x30] ss:$8 sps:$4 sm:$0xff]   ;;  %v2607_v56 = vld [vmem:[%s3303_s3 + $0x24] ss:$8 sps:$4 sm:$0xff]  }
  0x13   :  { %314 = vmatpush1.bf16.msra.mxu0 %v2547_v19  ;;  %427 = vmatpush1.bf16.msra.mxu1 %v2548_v20  ;;  %v2569_v53 = vld [vmem:[%s3302_s0 + $0x10] sm:$0xff]   ;;  %v2610_v57 = vld [vmem:[%s3303_s3 + $0x124] ss:$8 sps:$4 sm:$0xff]   ;;  %v2605_v58 = vld [vmem:[%s3303_s3 + $0x20] ss:$8 sps:$4 sm:$0xff]  }
  0x14   :  { %315 = vmatprep.subr.bf16.mxu0 %v2549_v21  ;;  %428 = vmatprep.subr.bf16.mxu1 %v2551_v22  ;;  %v2602_v55 = vld [vmem:[%s3303_s3 + $0x130] ss:$8 sps:$4 sm:$0xff]   ;;  %v2608_v59 = vld [vmem:[%s3303_s3 + $0x120] ss:$8 sps:$4 sm:$0xff]   ;;  %v2613_v60 = vld [vmem:[%s3303_s3 + $0x14] ss:$8 sps:$4 sm:$0xff]  }
  0x15   :  { %v2616_v61 = vld [vmem:[%s3303_s3 + $0x114] ss:$8 sps:$4 sm:$0xff]   ;;  %v2611_v63 = vld [vmem:[%s3303_s3 + $0x10] ss:$8 sps:$4 sm:$0xff]   ;;  %v2619_v2 = vld [vmem:[%s3303_s3 + $0x4] ss:$8 sps:$4 sm:$0xff]  }
  0x16   :  { %v2570_v62 = vld [vmem:[%s3302_s0 + $0x18] sm:$0xff]   ;;  %v2622_v3 = vld [vmem:[%s3303_s3 + $0x104] ss:$8 sps:$4 sm:$0xff]   ;;  %v2617_v4 = vld [vmem:[%s3303_s3] ss:$8 sps:$4 sm:$0xff]  }
  0x17   :  { %316 = vmatpush1.bf16.msra.mxu0 %v2553_v23  ;;  %429 = vmatpush1.bf16.msra.mxu1 %v2554_v24  ;;  %v2614_v0 = vld [vmem:[%s3303_s3 + $0x110] ss:$8 sps:$4 sm:$0xff]   ;;  %v2571_v5 = vld [vmem:[%s3302_s0 + $0x20] sm:$0xff]   ;;  %v2625_v7 = vld [vmem:[%s3303_s3 + $0xf4] ss:$8 sps:$4 sm:$0xff]  }
  0x18   :  { %317 = vmatprep.subr.bf16.mxu0 %v2555_v25  ;;  %430 = vmatprep.subr.bf16.mxu1 %v2557_v26  ;;  %v2620_v6 = vld [vmem:[%s3303_s3 + $0x100] ss:$8 sps:$4 sm:$0xff]   ;;  %v2628_v8 = vld [vmem:[%s3303_s3 + $0x1f4] ss:$8 sps:$4 sm:$0xff]   ;;  %v2623_v9 = vld [vmem:[%s3303_s3 + $0xf0] ss:$8 sps:$4 sm:$0xff]  }
  0x19   :  { %v2626_v10 = vld [vmem:[%s3303_s3 + $0x1f0] ss:$8 sps:$4 sm:$0xff]   ;;  %v2631_v11 = vld [vmem:[%s3303_s3 + $0xe4] ss:$8 sps:$4 sm:$0xff]   ;;  %v2629_v13 = vld [vmem:[%s3303_s3 + $0xe0] ss:$8 sps:$4 sm:$0xff]  }
  0x1a   :  { %v2634_v12 = vld [vmem:[%s3303_s3 + $0x1e4] ss:$8 sps:$4 sm:$0xff]   ;;  %v2632_v14 = vld [vmem:[%s3303_s3 + $0x1e0] ss:$8 sps:$4 sm:$0xff]   ;;  %v2637_v15 = vld [vmem:[%s3303_s3 + $0xd4] ss:$8 sps:$4 sm:$0xff]  }
  0x1b   :  { %318 = vmatpush1.bf16.msra.mxu0 %v2559_v27  ;;  %431 = vmatpush1.bf16.msra.mxu1 %v2560_v28  ;;  %v2640_v16 = vld [vmem:[%s3303_s3 + $0x1d4] ss:$8 sps:$4 sm:$0xff]   ;;  %v2572_v17 = vld [vmem:[%s3302_s0 + $0x28] sm:$0xff]   ;;  %v2635_v18 = vld [vmem:[%s3303_s3 + $0xd0] ss:$8 sps:$4 sm:$0xff]  }
  0x1c   :  { %319 = vmatprep.subr.bf16.mxu0 %v2561_v29  ;;  %432 = vmatprep.subr.bf16.mxu1 %v2563_v30  ;;  %v2638_v19 = vld [vmem:[%s3303_s3 + $0x1d0] ss:$8 sps:$4 sm:$0xff]   ;;  %v2643_v20 = vld [vmem:[%s3303_s3 + $0xc4] ss:$8 sps:$4 sm:$0xff]   ;;  %v2641_v22 = vld [vmem:[%s3303_s3 + $0xc0] ss:$8 sps:$4 sm:$0xff]  }
  0x1d   :  { %v2646_v21 = vld [vmem:[%s3303_s3 + $0x1c4] ss:$8 sps:$4 sm:$0xff]   ;;  %v2644_v23 = vld [vmem:[%s3303_s3 + $0x1c0] ss:$8 sps:$4 sm:$0xff]   ;;  %v2649_v24 = vld [vmem:[%s3303_s3 + $0xb4] ss:$8 sps:$4 sm:$0xff]  }
  0x1e   :  { %v2652_v25 = vld [vmem:[%s3303_s3 + $0x1b4] ss:$8 sps:$4 sm:$0xff]   ;;  %v2647_v27 = vld [vmem:[%s3303_s3 + $0xb0] ss:$8 sps:$4 sm:$0xff]   ;;  %v2655_v30 = vld [vmem:[%s3303_s3 + $0xa4] ss:$8 sps:$4 sm:$0xff]  }
  0x1f   :  { %320 = vmatpush1.bf16.msra.mxu0 %v2565_v31  ;;  %433 = vmatpush1.bf16.msra.mxu1 %v2566_v32  ;;  %v2573_v26 = vld [vmem:[%s3302_s0 + $0x30] sm:$0xff]   ;;  %v2574_v29 = vld [vmem:[%s3302_s0 + $0x38] sm:$0xff]   ;;  %v2658_v31 = vld [vmem:[%s3303_s3 + $0x1a4] ss:$8 sps:$4 sm:$0xff]  }
  0x20   :  { %1407 = vmatprep.subr.bf16.mxu0 %v2577_v33  ;;  %1520 = vmatprep.subr.bf16.mxu1 %v2580_v35  ;;  %v2650_v28 = vld [vmem:[%s3303_s3 + $0x1b0] ss:$8 sps:$4 sm:$0xff]   ;;  %v2656_v32 = vld [vmem:[%s3303_s3 + $0x1a0] ss:$8 sps:$4 sm:$0xff]   ;;  %v2661_v33 = vld [vmem:[%s3303_s3 + $0x94] ss:$8 sps:$4 sm:$0xff]  }
  0x21   :  { %v2659_v35 = vld [vmem:[%s3303_s3 + $0x90] ss:$8 sps:$4 sm:$0xff]  }
  0x22   :  { %338 = vmatmul.mubr.bf16.vlgmr.msra.gmra.mxu0 %v2567_v34  ;;  %451 = vmatmul.mubr.bf16.vlgmr.msra.gmra.mxu1 %v2567_v34  ;;  %v2664_v34 = vld [vmem:[%s3303_s3 + $0x194] ss:$8 sps:$4 sm:$0xff]  }
  0x23   :  { %347 = vmatprep.mubr.bf16.mxu0 %v2687_v1  ;;  %460 = vmatprep.mubr.bf16.mxu1 %v2687_v1 }
  0x24   :  { %1408 = vmatpush1.bf16.msra.mxu0 %v2575_v36  ;;  %1521 = vmatpush1.bf16.msra.mxu1 %v2578_v37  ;;  %v2662_v36 = vld [vmem:[%s3303_s3 + $0x190] ss:$8 sps:$4 sm:$0xff]   ;;  %v2667_v37 = vld [vmem:[%s3303_s3 + $0x84] ss:$8 sps:$4 sm:$0xff]  }
  0x25   :  { %1409 = vmatprep.subr.bf16.mxu0 %v2583_v38  ;;  %1522 = vmatprep.subr.bf16.mxu1 %v2586_v39  ;;  %v2670_v38 = vld [vmem:[%s3303_s3 + $0x184] ss:$8 sps:$4 sm:$0xff]   ;;  %v2665_v39 = vld [vmem:[%s3303_s3 + $0x80] ss:$8 sps:$4 sm:$0xff]  }
  0x28   :  { %1410 = vmatpush1.bf16.msra.mxu0 %v2581_v40  ;;  %1523 = vmatpush1.bf16.msra.mxu1 %v2584_v41  ;;  %v2668_v40 = vld [vmem:[%s3303_s3 + $0x180] ss:$8 sps:$4 sm:$0xff]   ;;  %v2671_v41 = vld [vmem:[%s3304_s5 + $0x78] sm:$0xff]  }
  0x29   :  { %1411 = vmatprep.subr.bf16.mxu0 %v2589_v42  ;;  %1524 = vmatprep.subr.bf16.mxu1 %v2592_v43  ;;  %v77_v42 = vlaneseq }
  0x2a   :  { %348 = vmatmul.mubr.bf16.gmra.mxu0 %v2568_v44  ;;  %461 = vmatmul.mubr.bf16.gmra.mxu1 %v2568_v44 }
  0x2b   :  { %357 = vmatprep.mubr.bf16.mxu0 %v2687_v1  ;;  %470 = vmatprep.mubr.bf16.mxu1 %v2687_v1  ;;  %v3059_v43 = vshrl.u32 %v77_v42, 7 }
  0x2c   :  { %1412 = vmatpush1.bf16.msra.mxu0 %v2587_v45  ;;  %1525 = vmatpush1.bf16.msra.mxu1 %v2590_v46 }
  0x2d   :  { %1413 = vmatprep.subr.bf16.mxu0 %v2595_v47  ;;  %1526 = vmatprep.subr.bf16.mxu1 %v2598_v48  ;;  %v83_v44 = vsub.s32 1, %v3059_v43  ;;  %v91_v45 = vsub.s32 3, %v3059_v43  ;;  %v79_v46 = vsub.s32 0, %v3059_v43  ;;  %v87_v47 = vsub.s32 2, %v3059_v43  ;;  %v75_v48 = vld [vmem:[%s3305_s2] sm:$0xf] }
  0x30   :  { %1414 = vmatpush1.bf16.msra.mxu0 %v2593_v49  ;;  %1527 = vmatpush1.bf16.msra.mxu1 %v2596_v50 }
  0x31   :  { %1415 = vmatprep.subr.bf16.mxu0 %v2601_v51  ;;  %1528 = vmatprep.subr.bf16.mxu1 %v2604_v52  ;;  %v3070_v51 = vrot.slane %v75_v48, %v83_v44  ;;  %v3072_v52 = vrot.slane %v75_v48, %v91_v45 }
  0x32   :  { %358 = vmatmul.mubr.bf16.gmra.mxu0 %v2569_v53  ;;  %471 = vmatmul.mubr.bf16.gmra.mxu1 %v2569_v53  ;;  %v3076_v53 = vrot.slane %v75_v48, %v79_v46 }
  0x33   :  { %367 = vmatprep.mubr.bf16.mxu0 %v2687_v1  ;;  %480 = vmatprep.mubr.bf16.mxu1 %v2687_v1 }
  0x34   :  { %1416 = vmatpush1.bf16.msra.mxu0 %v2599_v54  ;;  %1529 = vmatpush1.bf16.msra.mxu1 %v2602_v55  ;;  %v3078_v54 = vrot.slane %v75_v48, %v87_v47 }
  0x35   :  { %1417 = vmatprep.subr.bf16.mxu0 %v2607_v56  ;;  %1530 = vmatprep.subr.bf16.mxu1 %v2610_v57 }
  0x38   :  { %1418 = vmatpush1.bf16.msra.mxu0 %v2605_v58  ;;  %1531 = vmatpush1.bf16.msra.mxu1 %v2608_v59 }
  0x39   :  { %1419 = vmatprep.subr.bf16.mxu0 %v2613_v60  ;;  %1532 = vmatprep.subr.bf16.mxu1 %v2616_v61 }
  0x3a   :  { %368 = vmatmul.mubr.bf16.gmra.mxu0 %v2570_v62  ;;  %481 = vmatmul.mubr.bf16.gmra.mxu1 %v2570_v62 }
  0x3b   :  { %377 = vmatprep.mubr.bf16.mxu0 %v2687_v1  ;;  %490 = vmatprep.mubr.bf16.mxu1 %v2687_v1 }
  0x3c   :  { %1420 = vmatpush1.bf16.msra.mxu0 %v2611_v63  ;;  %1533 = vmatpush1.bf16.msra.mxu1 %v2614_v0 }
  0x3d   :  { %1421 = vmatprep.subr.bf16.mxu0 %v2619_v2  ;;  %1534 = vmatprep.subr.bf16.mxu1 %v2622_v3 }
  0x40   :  { %1422 = vmatpush1.bf16.msra.mxu0 %v2617_v4  ;;  %1535 = vmatpush1.bf16.msra.mxu1 %v2620_v6 }
  0x41   :  { %1423 = vmatprep.subr.bf16.mxu0 %v2625_v7  ;;  %1536 = vmatprep.subr.bf16.mxu1 %v2628_v8 }
  0x42   :  { %378 = vmatmul.mubr.bf16.gmra.mxu0 %v2571_v5  ;;  %491 = vmatmul.mubr.bf16.gmra.mxu1 %v2571_v5 }
  0x43   :  { %387 = vmatprep.mubr.bf16.mxu0 %v2687_v1  ;;  %500 = vmatprep.mubr.bf16.mxu1 %v2687_v1 }
  0x44   :  { %1424 = vmatpush2.bf16.msra.mxu0 %v2623_v9  ;;  %1537 = vmatpush2.bf16.msra.mxu1 %v2626_v10 }
  0x45   :  { %1425 = vmatprep.subr.bf16.mxu0 %v2631_v11  ;;  %1538 = vmatprep.subr.bf16.mxu1 %v2634_v12 }
  0x48   :  { %1426 = vmatpush2.bf16.msra.mxu0 %v2629_v13  ;;  %1539 = vmatpush2.bf16.msra.mxu1 %v2632_v14 }
  0x49   :  { %1427 = vmatprep.subr.bf16.mxu0 %v2637_v15  ;;  %1540 = vmatprep.subr.bf16.mxu1 %v2640_v16 }
  0x4a   :  { %388 = vmatmul.mubr.bf16.gmra.mxu0 %v2572_v17  ;;  %501 = vmatmul.mubr.bf16.gmra.mxu1 %v2572_v17 }
  0x4b   :  { %397 = vmatprep.mubr.bf16.mxu0 %v2687_v1  ;;  %510 = vmatprep.mubr.bf16.mxu1 %v2687_v1 }
  0x4c   :  { %1428 = vmatpush2.bf16.msra.mxu0 %v2635_v18  ;;  %1541 = vmatpush2.bf16.msra.mxu1 %v2638_v19 }
  0x4d   :  { %1429 = vmatprep.subr.bf16.mxu0 %v2643_v20  ;;  %1542 = vmatprep.subr.bf16.mxu1 %v2646_v21  ;;  %v2672_v20 = vld [vmem:[%s3304_s5 + $0x38] sm:$0xff]  }
  0x50   :  { %1430 = vmatpush2.bf16.msra.mxu0 %v2641_v22  ;;  %1543 = vmatpush2.bf16.msra.mxu1 %v2644_v23 }
  0x51   :  { %1431 = vmatprep.subr.bf16.mxu0 %v2649_v24  ;;  %1544 = vmatprep.subr.bf16.mxu1 %v2652_v25 }
  0x52   :  { %398 = vmatmul.mubr.bf16.gmra.mxu0 %v2573_v26  ;;  %511 = vmatmul.mubr.bf16.gmra.mxu1 %v2573_v26  ;;  %v2673_v26 = vld [vmem:[%s3304_s5 + $0x70] sm:$0xff]  }
  0x53   :  { %407 = vmatprep.mubr.bf16.mxu0 %v2687_v1  ;;  %520 = vmatprep.mubr.bf16.mxu1 %v2687_v1  ;;  %v2653_v1 = vld [vmem:[%s3303_s3 + $0xa0] ss:$8 sps:$4 sm:$0xff]  }
  0x54   :  { %1432 = vmatpush2.bf16.msra.mxu0 %v2647_v27  ;;  %1545 = vmatpush2.bf16.msra.mxu1 %v2650_v28 }
  0x55   :  { %1433 = vmatprep.subr.bf16.mxu0 %v2655_v30  ;;  %1546 = vmatprep.subr.bf16.mxu1 %v2658_v31 }
  0x58   :  { %1434 = vmatpush2.bf16.msra.mxu0 %v2653_v1  ;;  %1547 = vmatpush2.bf16.msra.mxu1 %v2656_v32 }
  0x59   :  { %1435 = vmatprep.subr.bf16.mxu0 %v2661_v33  ;;  %1548 = vmatprep.subr.bf16.mxu1 %v2664_v34 }
  0x5a   :  { %408 = vmatmul.mubr.bf16.gmra.mxu0 %v2574_v29  ;;  %521 = vmatmul.mubr.bf16.gmra.mxu1 %v2574_v29 }
  0x5c   :  { %1436 = vmatpush2.bf16.msra.mxu0 %v2659_v35  ;;  %1549 = vmatpush2.bf16.msra.mxu1 %v2662_v36  ;;  %v2674_v35 = vld [vmem:[%s3304_s5 + $0x30] sm:$0xff]  }
  0x5d   :  { %1437 = vmatprep.subr.bf16.mxu0 %v2667_v37  ;;  %1550 = vmatprep.subr.bf16.mxu1 %v2670_v38 }
  0x60   :  { %1438 = vmatpush2.bf16.msra.mxu0 %v2665_v39  ;;  %1551 = vmatpush2.bf16.msra.mxu1 %v2668_v40  ;;  %v2675_v40 = vld [vmem:[%s3304_s5 + $0x68] sm:$0xff]  }
  0x61   :  { %2438 = vmatprep.subr.bf16.mxu0 %v2671_v41  ;;  %2502 = vmatprep.subr.bf16.mxu1 %v2671_v41 }
  0xe2   :  { %v339_v49 = vpop.f32.mrf.mxu0  ;;  %v452_v50 = vpop.f32.mrf.mxu1 }
  0xe3   :  { %v340_v63 = vadd.f32 %v339_v49, %v3076_v53  ;;  %v453_v0 = vadd.f32 %v452_v50, %v3078_v54 }
  0xe4   :  { %v341_v55 = vpop.f32.mrf.mxu0  ;;  %v454_v56 = vpop.f32.mrf.mxu1 }
  0xe5   :  { %v342_v59 = vadd.f32 %v341_v55, %v3070_v51  ;;  %v455_v60 = vadd.f32 %v454_v56, %v3072_v52  ;;  %v531_v14 = vmax.f32 %v340_v63, 0.0  ;;  %v533_v15 = vmax.f32 %v453_v0, 0.0  ;;  %v2677_v0 = vld [vmem:[%s3304_s5 + $0x60] sm:$0xff]  }
  0xe6   :  { %v343_v57 = vpop.f32.mrf.mxu0  ;;  %v456_v58 = vpop.f32.mrf.mxu1 }
  0xe7   :  { %v344_v61 = vadd.f32 %v343_v57, %v3076_v53  ;;  %v457_v62 = vadd.f32 %v456_v58, %v3078_v54  ;;  %v532_v10 = vmax.f32 %v342_v59, 0.0  ;;  %v534_v11 = vmax.f32 %v455_v60, 0.0  ;;  %v2676_v58 = vld [vmem:[%s3304_s5 + $0x28] sm:$0xff]  }
  0xe8   :  { %v345_v2 = vpop.f32.mrf.mxu0  ;;  %v458_v3 = vpop.f32.mrf.mxu1 }
  0xe9   :  { %v346_v4 = vadd.f32 %v345_v2, %v3070_v51  ;;  %v459_v5 = vadd.f32 %v458_v3, %v3072_v52  ;;  %v535_v6 = vmax.f32 %v344_v61, 0.0  ;;  %v537_v7 = vmax.f32 %v457_v62, 0.0 }
  0xea   :  { %v349_v8 = vpop.f32.mrf.mxu0  ;;  %v462_v9 = vpop.f32.mrf.mxu1 }
  0xeb   :  { %v536_v12 = vmax.f32 %v346_v4, 0.0  ;;  %v538_v13 = vmax.f32 %v459_v5, 0.0  ;;  %v2390_v21 = vpack.c.bf16 %v535_v6, %v531_v14  ;;  %v2392_v22 = vpack.c.bf16 %v537_v7, %v533_v15 }
  0xec   :  { %v351_v16 = vpop.f32.mrf.mxu0  ;;  %v464_v17 = vpop.f32.mrf.mxu1  ;;  %v350_v30 = vadd.f32 %v349_v8, %v3076_v53  ;;  %v463_v31 = vadd.f32 %v462_v9, %v3078_v54 }
  0xed   :  { %v2391_v18 = vpack.c.bf16 %v536_v12, %v532_v10  ;;  %v2393_v19 = vpack.c.bf16 %v538_v13, %v534_v11  ;;  %v352_v23 = vadd.f32 %v351_v16, %v3070_v51  ;;  %v465_v27 = vadd.f32 %v464_v17, %v3072_v52  ;;  %v2678_v11 = vld [vmem:[%s3304_s5 + $0x20] sm:$0xff]  }
  0xee   :  { %v353_v24 = vpop.f32.mrf.mxu0  ;;  %v466_v25 = vpop.f32.mrf.mxu1  ;;  %v539_v48 = vmax.f32 %v350_v30, 0.0  ;;  %v541_v49 = vmax.f32 %v463_v31, 0.0 }
  0xef   :  { %v354_v28 = vadd.f32 %v353_v24, %v3076_v53  ;;  %v467_v29 = vadd.f32 %v466_v25, %v3078_v54  ;;  %1439 = vmatprep.mubr.bf16.mxu0 %v2391_v18  ;;  %1552 = vmatprep.mubr.bf16.mxu1 %v2393_v19  ;;  %v540_v41 = vmax.f32 %v352_v23, 0.0  ;;  %v542_v42 = vmax.f32 %v465_v27, 0.0 }
  0xf0   :  { %v355_v1 = vpop.f32.mrf.mxu0  ;;  %v468_v32 = vpop.f32.mrf.mxu1  ;;  %1440 = vmatmul.mubr.bf16.vlgmr.msra.gmra.mxu0 %v2390_v21  ;;  %1553 = vmatmul.mubr.bf16.vlgmr.msra.gmra.mxu1 %v2392_v22 }
  0xf1   :  { %v356_v33 = vadd.f32 %v355_v1, %v3070_v51  ;;  %v469_v34 = vadd.f32 %v468_v32, %v3072_v52  ;;  %2439 = vmatpush3.bf16.msra.mxu0 %v2672_v20  ;;  %2510 = vmatpush3.bf16.msra.mxu1 %v2672_v20  ;;  %v543_v36 = vmax.f32 %v354_v28, 0.0  ;;  %v545_v37 = vmax.f32 %v467_v29, 0.0 }
  0xf2   :  { %v359_v38 = vpop.f32.mrf.mxu0  ;;  %v472_v39 = vpop.f32.mrf.mxu1  ;;  %2440 = vmatprep.subr.bf16.mxu0 %v2673_v26  ;;  %2503 = vmatprep.subr.bf16.mxu1 %v2673_v26 }
  0xf3   :  { %v544_v45 = vmax.f32 %v356_v33, 0.0  ;;  %v546_v47 = vmax.f32 %v469_v34, 0.0  ;;  %v2394_v59 = vpack.c.bf16 %v543_v36, %v539_v48  ;;  %v2396_v60 = vpack.c.bf16 %v545_v37, %v541_v49 }
  0xf4   :  { %v361_v50 = vpop.f32.mrf.mxu0  ;;  %v474_v55 = vpop.f32.mrf.mxu1  ;;  %v360_v5 = vadd.f32 %v359_v38, %v3076_v53  ;;  %v473_v6 = vadd.f32 %v472_v39, %v3078_v54 }
  0xf5   :  { %v2395_v56 = vpack.c.bf16 %v544_v45, %v540_v41  ;;  %v2397_v57 = vpack.c.bf16 %v546_v47, %v542_v42  ;;  %2441 = vmatpush3.bf16.msra.mxu0 %v2674_v35  ;;  %v362_v61 = vadd.f32 %v361_v50, %v3070_v51  ;;  %2511 = vmatpush3.bf16.msra.mxu1 %v2674_v35 }
  0xf6   :  { %v363_v62 = vpop.f32.mrf.mxu0  ;;  %v476_v63 = vpop.f32.mrf.mxu1  ;;  %2442 = vmatprep.subr.bf16.mxu0 %v2675_v40  ;;  %v475_v2 = vadd.f32 %v474_v55, %v3072_v52  ;;  %2504 = vmatprep.subr.bf16.mxu1 %v2675_v40  ;;  %v547_v20 = vmax.f32 %v360_v5, 0.0  ;;  %v549_v21 = vmax.f32 %v473_v6, 0.0 }
  0xf7   :  { %v364_v3 = vadd.f32 %v363_v62, %v3076_v53  ;;  %v477_v4 = vadd.f32 %v476_v63, %v3078_v54  ;;  %1449 = vmatprep.mubr.bf16.mxu0 %v2395_v56  ;;  %1562 = vmatprep.mubr.bf16.mxu1 %v2397_v57  ;;  %v548_v16 = vmax.f32 %v362_v61, 0.0 }
  0xf8   :  { %v365_v7 = vpop.f32.mrf.mxu0  ;;  %v478_v8 = vpop.f32.mrf.mxu1  ;;  %1450 = vmatmul.mubr.bf16.gmra.mxu0 %v2394_v59  ;;  %1563 = vmatmul.mubr.bf16.gmra.mxu1 %v2396_v60  ;;  %v550_v17 = vmax.f32 %v475_v2, 0.0 }
  0xf9   :  { %v366_v9 = vadd.f32 %v365_v7, %v3070_v51  ;;  %v479_v10 = vadd.f32 %v478_v8, %v3072_v52  ;;  %2443 = vmatpush3.bf16.msra.mxu0 %v2676_v58  ;;  %v551_v12 = vmax.f32 %v364_v3, 0.0  ;;  %v553_v13 = vmax.f32 %v477_v4, 0.0  ;;  %2512 = vmatpush3.bf16.msra.mxu1 %v2676_v58 }
  0xfa   :  { %v369_v14 = vpop.f32.mrf.mxu0  ;;  %v482_v15 = vpop.f32.mrf.mxu1  ;;  %2444 = vmatprep.subr.bf16.mxu0 %v2677_v0  ;;  %2505 = vmatprep.subr.bf16.mxu1 %v2677_v0 }
  0xfb   :  { %v552_v18 = vmax.f32 %v366_v9, 0.0  ;;  %v554_v19 = vmax.f32 %v479_v10, 0.0  ;;  %v2398_v26 = vpack.c.bf16 %v551_v12, %v547_v20  ;;  %v2400_v27 = vpack.c.bf16 %v553_v13, %v549_v21 }
  0xfc   :  { %v371_v22 = vpop.f32.mrf.mxu0  ;;  %v484_v23 = vpop.f32.mrf.mxu1  ;;  %v370_v33 = vadd.f32 %v369_v14, %v3076_v53  ;;  %v483_v34 = vadd.f32 %v482_v15, %v3078_v54 }
  0xfd   :  { %v2399_v24 = vpack.c.bf16 %v552_v18, %v548_v16  ;;  %v2401_v25 = vpack.c.bf16 %v554_v19, %v550_v17  ;;  %2445 = vmatpush3.bf16.msra.mxu0 %v2678_v11  ;;  %v372_v28 = vadd.f32 %v371_v22, %v3070_v51  ;;  %2513 = vmatpush3.bf16.msra.mxu1 %v2678_v11 }
  0xfe   :  { %v373_v29 = vpop.f32.mrf.mxu0  ;;  %v486_v30 = vpop.f32.mrf.mxu1  ;;  %v485_v31 = vadd.f32 %v484_v23, %v3072_v52  ;;  %v555_v50 = vmax.f32 %v370_v33, 0.0  ;;  %v557_v55 = vmax.f32 %v483_v34, 0.0 }
  0xff   :  { %v374_v1 = vadd.f32 %v373_v29, %v3076_v53  ;;  %v487_v32 = vadd.f32 %v486_v30, %v3078_v54  ;;  %1459 = vmatprep.mubr.bf16.mxu0 %v2399_v24  ;;  %1572 = vmatprep.mubr.bf16.mxu1 %v2401_v25  ;;  %v556_v45 = vmax.f32 %v372_v28, 0.0 }
 0x100   :  { %v375_v35 = vpop.f32.mrf.mxu0  ;;  %v488_v36 = vpop.f32.mrf.mxu1  ;;  %1460 = vmatmul.mubr.bf16.gmra.mxu0 %v2398_v26  ;;  %1573 = vmatmul.mubr.bf16.gmra.mxu1 %v2400_v27  ;;  %v558_v47 = vmax.f32 %v485_v31, 0.0 }
 0x101   :  { %v376_v37 = vadd.f32 %v375_v35, %v3070_v51  ;;  %v489_v38 = vadd.f32 %v488_v36, %v3072_v52  ;;  %v559_v39 = vmax.f32 %v374_v1, 0.0  ;;  %v561_v40 = vmax.f32 %v487_v32, 0.0 }
 0x102   :  { %v379_v41 = vpop.f32.mrf.mxu0  ;;  %v492_v42 = vpop.f32.mrf.mxu1 }
 0x103   :  { %v560_v48 = vmax.f32 %v376_v37, 0.0  ;;  %v562_v49 = vmax.f32 %v489_v38, 0.0  ;;  %v2402_v60 = vpack.c.bf16 %v559_v39, %v555_v50  ;;  %v2404_v61 = vpack.c.bf16 %v561_v40, %v557_v55 }
 0x104   :  { %v381_v56 = vpop.f32.mrf.mxu0  ;;  %v494_v57 = vpop.f32.mrf.mxu1  ;;  %v380_v5 = vadd.f32 %v379_v41, %v3076_v53  ;;  %v493_v6 = vadd.f32 %v492_v42, %v3078_v54 }
 0x105   :  { %v2403_v58 = vpack.c.bf16 %v560_v48, %v556_v45  ;;  %v2405_v59 = vpack.c.bf16 %v562_v49, %v558_v47  ;;  %v382_v62 = vadd.f32 %v381_v56, %v3070_v51  ;;  %v495_v2 = vadd.f32 %v494_v57, %v3072_v52 }
 0x106   :  { %v383_v63 = vpop.f32.mrf.mxu0  ;;  %v496_v0 = vpop.f32.mrf.mxu1  ;;  %v563_v19 = vmax.f32 %v380_v5, 0.0  ;;  %v565_v20 = vmax.f32 %v493_v6, 0.0 }
 0x107   :  { %v384_v3 = vadd.f32 %v383_v63, %v3076_v53  ;;  %v497_v4 = vadd.f32 %v496_v0, %v3078_v54  ;;  %1469 = vmatprep.mubr.bf16.mxu0 %v2403_v58  ;;  %1582 = vmatprep.mubr.bf16.mxu1 %v2405_v59  ;;  %v564_v15 = vmax.f32 %v382_v62, 0.0  ;;  %v566_v16 = vmax.f32 %v495_v2, 0.0 }
 0x108   :  { %v385_v7 = vpop.f32.mrf.mxu0  ;;  %v498_v8 = vpop.f32.mrf.mxu1  ;;  %1470 = vmatmul.mubr.bf16.gmra.mxu0 %v2402_v60  ;;  %1583 = vmatmul.mubr.bf16.gmra.mxu1 %v2404_v61 }
 0x109   :  { %v386_v9 = vadd.f32 %v385_v7, %v3070_v51  ;;  %v499_v10 = vadd.f32 %v498_v8, %v3072_v52  ;;  %v567_v11 = vmax.f32 %v384_v3, 0.0  ;;  %v569_v12 = vmax.f32 %v497_v4, 0.0 }
 0x10a   :  { %v389_v13 = vpop.f32.mrf.mxu0  ;;  %v502_v14 = vpop.f32.mrf.mxu1 }
 0x10b   :  { %v568_v17 = vmax.f32 %v386_v9, 0.0  ;;  %v570_v18 = vmax.f32 %v499_v10, 0.0  ;;  %v2406_v25 = vpack.c.bf16 %v567_v11, %v563_v19  ;;  %v2408_v26 = vpack.c.bf16 %v569_v12, %v565_v20 }
 0x10c   :  { %v391_v21 = vpop.f32.mrf.mxu0  ;;  %v504_v22 = vpop.f32.mrf.mxu1  ;;  %v390_v32 = vadd.f32 %v389_v13, %v3076_v53  ;;  %v503_v33 = vadd.f32 %v502_v14, %v3078_v54 }
 0x10d   :  { %v2407_v23 = vpack.c.bf16 %v568_v17, %v564_v15  ;;  %v2409_v24 = vpack.c.bf16 %v570_v18, %v566_v16  ;;  %v392_v27 = vadd.f32 %v391_v21, %v3070_v51  ;;  %v505_v30 = vadd.f32 %v504_v22, %v3072_v52 }
 0x10e   :  { %v393_v28 = vpop.f32.mrf.mxu0  ;;  %v506_v29 = vpop.f32.mrf.mxu1  ;;  %v571_v49 = vmax.f32 %v390_v32, 0.0  ;;  %v573_v50 = vmax.f32 %v503_v33, 0.0 }
 0x10f   :  { %v394_v31 = vadd.f32 %v393_v28, %v3076_v53  ;;  %v507_v1 = vadd.f32 %v506_v29, %v3078_v54  ;;  %1479 = vmatprep.mubr.bf16.mxu0 %v2407_v23  ;;  %1592 = vmatprep.mubr.bf16.mxu1 %v2409_v24  ;;  %v572_v42 = vmax.f32 %v392_v27, 0.0  ;;  %v574_v45 = vmax.f32 %v505_v30, 0.0 }
 0x110   :  { %v395_v34 = vpop.f32.mrf.mxu0  ;;  %v508_v35 = vpop.f32.mrf.mxu1  ;;  %1480 = vmatmul.mubr.bf16.gmra.mxu0 %v2406_v25  ;;  %1593 = vmatmul.mubr.bf16.gmra.mxu1 %v2408_v26 }
 0x111   :  { %v396_v36 = vadd.f32 %v395_v34, %v3070_v51  ;;  %v509_v37 = vadd.f32 %v508_v35, %v3072_v52  ;;  %v575_v38 = vmax.f32 %v394_v31, 0.0  ;;  %v577_v39 = vmax.f32 %v507_v1, 0.0 }
 0x112   :  { %v399_v40 = vpop.f32.mrf.mxu0  ;;  %v512_v41 = vpop.f32.mrf.mxu1 }
 0x113   :  { %v576_v47 = vmax.f32 %v396_v36, 0.0  ;;  %v578_v48 = vmax.f32 %v509_v37, 0.0  ;;  %v2410_v59 = vpack.c.bf16 %v575_v38, %v571_v49  ;;  %v2412_v60 = vpack.c.bf16 %v577_v39, %v573_v50  ;;  %v2681_v50 = vld [vmem:[%s3304_s5 + $0x50] sm:$0xff]  }
 0x114   :  { %v401_v55 = vpop.f32.mrf.mxu0  ;;  %v514_v56 = vpop.f32.mrf.mxu1  ;;  %v400_v4 = vadd.f32 %v399_v40, %v3076_v53  ;;  %v513_v5 = vadd.f32 %v512_v41, %v3078_v54 }
 0x115   :  { %v2411_v57 = vpack.c.bf16 %v576_v47, %v572_v42  ;;  %v2413_v58 = vpack.c.bf16 %v578_v48, %v574_v45  ;;  %v402_v61 = vadd.f32 %v401_v55, %v3070_v51  ;;  %v515_v0 = vadd.f32 %v514_v56, %v3072_v52  ;;  %v2682_v55 = vld [vmem:[%s3304_s5 + $0x10] sm:$0xff]   ;;  %v2683_v56 = vld [vmem:[%s3304_s5 + $0x48] sm:$0xff]  }
 0x116   :  { %v403_v62 = vpop.f32.mrf.mxu0  ;;  %v516_v63 = vpop.f32.mrf.mxu1  ;;  %v579_v18 = vmax.f32 %v400_v4, 0.0  ;;  %v581_v19 = vmax.f32 %v513_v5, 0.0 }
 0x117   :  { %v404_v2 = vadd.f32 %v403_v62, %v3076_v53  ;;  %v517_v3 = vadd.f32 %v516_v63, %v3078_v54  ;;  %1489 = vmatprep.mubr.bf16.mxu0 %v2411_v57  ;;  %1602 = vmatprep.mubr.bf16.mxu1 %v2413_v58  ;;  %v580_v14 = vmax.f32 %v402_v61, 0.0  ;;  %v582_v15 = vmax.f32 %v515_v0, 0.0  ;;  %v2684_v57 = vld [vmem:[%s3304_s5 + $0x8] sm:$0xff]   ;;  %v2685_v58 = vld [vmem:[%s3304_s5 + $0x40] sm:$0xff]  }
 0x118   :  { %v405_v6 = vpop.f32.mrf.mxu0  ;;  %v518_v7 = vpop.f32.mrf.mxu1  ;;  %1490 = vmatmul.mubr.bf16.gmra.mxu0 %v2410_v59  ;;  %1603 = vmatmul.mubr.bf16.gmra.mxu1 %v2412_v60  ;;  %v2686_v59 = vld [vmem:[%s3304_s5] sm:$0xff]  }
 0x119   :  { %v406_v8 = vadd.f32 %v405_v6, %v3070_v51  ;;  %v519_v9 = vadd.f32 %v518_v7, %v3072_v52  ;;  %v583_v10 = vmax.f32 %v404_v2, 0.0  ;;  %v585_v11 = vmax.f32 %v517_v3, 0.0  ;;  %v915_v60 = vld [vmem:[%s3306_s4] sm:$0x3] }
 0x11a   :  { %v409_v12 = vpop.f32.mrf.mxu0  ;;  %v522_v13 = vpop.f32.mrf.mxu1  ;;  %v3194_v61 = vrot.slane %v915_v60, %v83_v44  ;;  %v3198_v62 = vrot.slane %v915_v60, %v79_v46 }
 0x11b   :  { %v584_v16 = vmax.f32 %v406_v8, 0.0  ;;  %v586_v17 = vmax.f32 %v519_v9, 0.0  ;;  %v2414_v24 = vpack.c.bf16 %v583_v10, %v579_v18  ;;  %v2416_v25 = vpack.c.bf16 %v585_v11, %v581_v19 }
 0x11c   :  { %v411_v20 = vpop.f32.mrf.mxu0  ;;  %v524_v21 = vpop.f32.mrf.mxu1  ;;  %v410_v1 = vadd.f32 %v409_v12, %v3076_v53  ;;  %v523_v32 = vadd.f32 %v522_v13, %v3078_v54 }
 0x11d   :  { %v2415_v22 = vpack.c.bf16 %v584_v16, %v580_v14  ;;  %v2417_v23 = vpack.c.bf16 %v586_v17, %v582_v15  ;;  %v412_v26 = vadd.f32 %v411_v20, %v3070_v51  ;;  %v525_v29 = vadd.f32 %v524_v21, %v3072_v52 }
 0x11e   :  { %v413_v27 = vpop.f32.mrf.mxu0  ;;  %v526_v28 = vpop.f32.mrf.mxu1  ;;  %v587_v45 = vmax.f32 %v410_v1, 0.0  ;;  %v589_v47 = vmax.f32 %v523_v32, 0.0 }
 0x11f   :  { %v414_v30 = vadd.f32 %v413_v27, %v3076_v53  ;;  %v527_v31 = vadd.f32 %v526_v28, %v3078_v54  ;;  %1499 = vmatprep.mubr.bf16.mxu0 %v2415_v22  ;;  %1612 = vmatprep.mubr.bf16.mxu1 %v2417_v23  ;;  %v588_v39 = vmax.f32 %v412_v26, 0.0  ;;  %v590_v40 = vmax.f32 %v525_v29, 0.0 }
 0x120   :  { %v415_v33 = vpop.f32.mrf.mxu0  ;;  %v528_v34 = vpop.f32.mrf.mxu1  ;;  %1500 = vmatmul.mubr.bf16.gmra.mxu0 %v2414_v24  ;;  %1613 = vmatmul.mubr.bf16.gmra.mxu1 %v2416_v25 }
 0x121   :  { %v416_v35 = vadd.f32 %v415_v33, %v3070_v51  ;;  %v529_v36 = vadd.f32 %v528_v34, %v3072_v52  ;;  %v591_v37 = vmax.f32 %v414_v30, 0.0  ;;  %v593_v38 = vmax.f32 %v527_v31, 0.0  ;;  %v2679_v51 = vld [vmem:[%s3304_s5 + $0x58] sm:$0xff]  }
 0x122   :  { %v2680_v52 = vld [vmem:[%s3304_s5 + $0x18] sm:$0xff]   ;;  %2446 = vmatprep.subr.bf16.mxu0 %v2679_v51  ;;  %2506 = vmatprep.subr.bf16.mxu1 %v2679_v51 }
 0x123   :  { %v592_v41 = vmax.f32 %v416_v35, 0.0  ;;  %v594_v42 = vmax.f32 %v529_v36, 0.0  ;;  %v2418_v49 = vpack.c.bf16 %v591_v37, %v587_v45  ;;  %v2420_v54 = vpack.c.bf16 %v593_v38, %v589_v47  ;;  %2447 = vmatpush3.bf16.msra.mxu0 %v2680_v52  ;;  %2514 = vmatpush3.bf16.msra.mxu1 %v2680_v52 }
 0x124   :  { %2448 = vmatprep.subr.bf16.mxu0 %v2681_v50  ;;  %2507 = vmatprep.subr.bf16.mxu1 %v2681_v50 }
 0x125   :  { %v2419_v48 = vpack.c.bf16 %v592_v41, %v588_v39  ;;  %v2421_v53 = vpack.c.bf16 %v594_v42, %v590_v40 }
 0x127   :  { %1509 = vmatprep.mubr.bf16.mxu0 %v2419_v48  ;;  %1622 = vmatprep.mubr.bf16.mxu1 %v2421_v53 }
 0x128   :  { %1510 = vmatmul.mubr.bf16.gmra.mxu0 %v2418_v49  ;;  %1623 = vmatmul.mubr.bf16.gmra.mxu1 %v2420_v54 }
 0x129   :  { %2449 = vmatpush3.bf16.msra.mxu0 %v2682_v55  ;;  %2515 = vmatpush3.bf16.msra.mxu1 %v2682_v55 }
 0x12a   :  { %2450 = vmatprep.subr.bf16.mxu0 %v2683_v56  ;;  %2508 = vmatprep.subr.bf16.mxu1 %v2683_v56 }
 0x12d   :  { %2451 = vmatpush3.bf16.msra.mxu0 %v2684_v57  ;;  %2516 = vmatpush3.bf16.msra.mxu1 %v2684_v57 }
 0x12e   :  { %2452 = vmatprep.subr.bf16.mxu0 %v2685_v58  ;;  %2509 = vmatprep.subr.bf16.mxu1 %v2685_v58 }
 0x131   :  { %2453 = vmatpush3.bf16.msra.mxu0 %v2686_v59  ;;  %2517 = vmatpush3.bf16.msra.mxu1 %v2686_v59 }
 0x1b0   :  { %v1441_v63 = vpop.f32.mrf.mxu0  ;;  %v1554_v0 = vpop.f32.mrf.mxu1 }
 0x1b1   :  { %v1442_v5 = vadd.f32 %v1441_v63, %v3198_v62 }
 0x1b2   :  { %v1443_v2 = vpop.f32.mrf.mxu0  ;;  %v1556_v3 = vpop.f32.mrf.mxu1 }
 0x1b3   :  { %v1444_v4 = vadd.f32 %v1443_v2, %v3194_v61  ;;  %v1555_v46 = vadd.f32 %v1554_v0, %v1442_v5 }
 0x1b4   :  { %v1445_v6 = vpop.f32.mrf.mxu0  ;;  %v1558_v7 = vpop.f32.mrf.mxu1 }
 0x1b5   :  { %v1446_v8 = vadd.f32 %v1445_v6, %v3198_v62  ;;  %v1557_v44 = vadd.f32 %v1556_v3, %v1444_v4  ;;  %v1633_v21 = vmax.f32 %v1555_v46, 0.0 }
 0x1b6   :  { %v1447_v9 = vpop.f32.mrf.mxu0  ;;  %v1560_v10 = vpop.f32.mrf.mxu1 }
 0x1b7   :  { %v1559_v11 = vadd.f32 %v1558_v7, %v1446_v8  ;;  %v1448_v43 = vadd.f32 %v1447_v9, %v3194_v61  ;;  %v1634_v18 = vmax.f32 %v1557_v44, 0.0 }
 0x1b8   :  { %v1451_v12 = vpop.f32.mrf.mxu0  ;;  %v1564_v13 = vpop.f32.mrf.mxu1 }
 0x1b9   :  { %v1561_v14 = vadd.f32 %v1560_v10, %v1448_v43  ;;  %v1635_v15 = vmax.f32 %v1559_v11, 0.0  ;;  %v1452_v22 = vadd.f32 %v1451_v12, %v3198_v62 }
 0x1ba   :  { %v1453_v16 = vpop.f32.mrf.mxu0  ;;  %v1566_v17 = vpop.f32.mrf.mxu1 }
 0x1bb   :  { %v1636_v19 = vmax.f32 %v1561_v14, 0.0  ;;  %v1454_v20 = vadd.f32 %v1453_v16, %v3194_v61  ;;  %v2422_v27 = vpack.c.bf16 %v1635_v15, %v1633_v21  ;;  %v1565_v32 = vadd.f32 %v1564_v13, %v1452_v22 }
 0x1bc   :  { %v1455_v23 = vpop.f32.mrf.mxu0  ;;  %v1568_v24 = vpop.f32.mrf.mxu1 }
 0x1bd   :  { %v2423_v25 = vpack.c.bf16 %v1636_v19, %v1634_v18  ;;  %v1456_v26 = vadd.f32 %v1455_v23, %v3198_v62  ;;  %v1567_v30 = vadd.f32 %v1566_v17, %v1454_v20  ;;  %v1637_v42 = vmax.f32 %v1565_v32, 0.0 }
 0x1be   :  { %v1457_v28 = vpop.f32.mrf.mxu0  ;;  %v1570_v29 = vpop.f32.mrf.mxu1 }
 0x1bf   :  { %v1569_v31 = vadd.f32 %v1568_v24, %v1456_v26  ;;  %v1458_v1 = vadd.f32 %v1457_v28, %v3194_v61  ;;  %2040 = vmatprep.mubr.bf16.mxu0 %v2423_v25  ;;  %v1638_v39 = vmax.f32 %v1567_v30, 0.0 }
 0x1c0   :  { %v1461_v33 = vpop.f32.mrf.mxu0  ;;  %v1574_v34 = vpop.f32.mrf.mxu1  ;;  %2041 = vmatmul.mubr.bf16.vlgmr.msra.gmra.mxu0 %v2422_v27 }
 0x1c1   :  { %v1571_v35 = vadd.f32 %v1570_v29, %v1458_v1  ;;  %v1639_v36 = vmax.f32 %v1569_v31, 0.0  ;;  %v1462_v45 = vadd.f32 %v1461_v33, %v3198_v62 }
 0x1c2   :  { %v1463_v37 = vpop.f32.mrf.mxu0  ;;  %v1576_v38 = vpop.f32.mrf.mxu1 }
 0x1c3   :  { %v1640_v40 = vmax.f32 %v1571_v35, 0.0  ;;  %v1464_v41 = vadd.f32 %v1463_v37, %v3194_v61  ;;  %v2424_v54 = vpack.c.bf16 %v1639_v36, %v1637_v42  ;;  %v1575_v57 = vadd.f32 %v1574_v34, %v1462_v45 }
 0x1c4   :  { %v1465_v47 = vpop.f32.mrf.mxu0  ;;  %v1578_v48 = vpop.f32.mrf.mxu1 }
 0x1c5   :  { %v2425_v53 = vpack.c.bf16 %v1640_v40, %v1638_v39  ;;  %v1466_v49 = vadd.f32 %v1465_v47, %v3198_v62  ;;  %v1577_v50 = vadd.f32 %v1576_v38, %v1464_v41  ;;  %v1641_v6 = vmax.f32 %v1575_v57, 0.0 }
 0x1c6   :  { %v1467_v51 = vpop.f32.mrf.mxu0  ;;  %v1580_v52 = vpop.f32.mrf.mxu1 }
 0x1c7   :  { %v1579_v55 = vadd.f32 %v1578_v48, %v1466_v49  ;;  %v1468_v56 = vadd.f32 %v1467_v51, %v3194_v61  ;;  %2048 = vmatprep.mubr.bf16.mxu0 %v2425_v53  ;;  %v1642_v3 = vmax.f32 %v1577_v50, 0.0 }
 0x1c8   :  { %v1471_v58 = vpop.f32.mrf.mxu0  ;;  %v1584_v59 = vpop.f32.mrf.mxu1  ;;  %2049 = vmatmul.mubr.bf16.gmra.mxu0 %v2424_v54 }
 0x1c9   :  { %v1581_v60 = vadd.f32 %v1580_v52, %v1468_v56  ;;  %v1643_v63 = vmax.f32 %v1579_v55, 0.0  ;;  %v1472_v7 = vadd.f32 %v1471_v58, %v3198_v62 }
 0x1ca   :  { %v1473_v0 = vpop.f32.mrf.mxu0  ;;  %v1586_v2 = vpop.f32.mrf.mxu1 }
 0x1cb   :  { %v1644_v4 = vmax.f32 %v1581_v60, 0.0  ;;  %v1474_v5 = vadd.f32 %v1473_v0, %v3194_v61  ;;  %v2426_v11 = vpack.c.bf16 %v1643_v63, %v1641_v6  ;;  %v1585_v15 = vadd.f32 %v1584_v59, %v1472_v7 }
 0x1cc   :  { %v1475_v8 = vpop.f32.mrf.mxu0  ;;  %v1588_v9 = vpop.f32.mrf.mxu1 }
 0x1cd   :  { %v2427_v10 = vpack.c.bf16 %v1644_v4, %v1642_v3  ;;  %v1476_v44 = vadd.f32 %v1475_v8, %v3198_v62  ;;  %v1587_v12 = vadd.f32 %v1586_v2, %v1474_v5  ;;  %v1645_v25 = vmax.f32 %v1585_v15, 0.0 }
 0x1ce   :  { %v1477_v43 = vpop.f32.mrf.mxu0  ;;  %v1590_v46 = vpop.f32.mrf.mxu1 }
 0x1cf   :  { %v1589_v13 = vadd.f32 %v1588_v9, %v1476_v44  ;;  %v1478_v14 = vadd.f32 %v1477_v43, %v3194_v61  ;;  %2056 = vmatprep.mubr.bf16.mxu0 %v2427_v10  ;;  %v1646_v22 = vmax.f32 %v1587_v12, 0.0 }
 0x1d0   :  { %v1481_v16 = vpop.f32.mrf.mxu0  ;;  %v1594_v17 = vpop.f32.mrf.mxu1  ;;  %2057 = vmatmul.mubr.bf16.gmra.mxu0 %v2426_v11 }
 0x1d1   :  { %v1591_v18 = vadd.f32 %v1590_v46, %v1478_v14  ;;  %v1647_v19 = vmax.f32 %v1589_v13, 0.0  ;;  %v1482_v26 = vadd.f32 %v1481_v16, %v3198_v62 }
 0x1d2   :  { %v1483_v20 = vpop.f32.mrf.mxu0  ;;  %v1596_v21 = vpop.f32.mrf.mxu1 }
 0x1d3   :  { %v1648_v23 = vmax.f32 %v1591_v18, 0.0  ;;  %v1484_v24 = vadd.f32 %v1483_v20, %v3194_v61  ;;  %v2428_v31 = vpack.c.bf16 %v1647_v19, %v1645_v25  ;;  %v1595_v36 = vadd.f32 %v1594_v17, %v1482_v26 }
 0x1d4   :  { %v1485_v27 = vpop.f32.mrf.mxu0  ;;  %v1598_v28 = vpop.f32.mrf.mxu1 }
 0x1d5   :  { %v2429_v29 = vpack.c.bf16 %v1648_v23, %v1646_v22  ;;  %v1486_v30 = vadd.f32 %v1485_v27, %v3198_v62  ;;  %v1597_v33 = vadd.f32 %v1596_v21, %v1484_v24  ;;  %v1649_v53 = vmax.f32 %v1595_v36, 0.0 }
 0x1d6   :  { %v1487_v1 = vpop.f32.mrf.mxu0  ;;  %v1600_v32 = vpop.f32.mrf.mxu1 }
 0x1d7   :  { %v1599_v34 = vadd.f32 %v1598_v28, %v1486_v30  ;;  %v1488_v35 = vadd.f32 %v1487_v1, %v3194_v61  ;;  %2064 = vmatprep.mubr.bf16.mxu0 %v2429_v29  ;;  %v1650_v45 = vmax.f32 %v1597_v33, 0.0 }
 0x1d8   :  { %v1491_v37 = vpop.f32.mrf.mxu0  ;;  %v1604_v38 = vpop.f32.mrf.mxu1  ;;  %2065 = vmatmul.mubr.bf16.gmra.mxu0 %v2428_v31 }
 0x1d9   :  { %v1601_v39 = vadd.f32 %v1600_v32, %v1488_v35  ;;  %v1651_v40 = vmax.f32 %v1599_v34, 0.0  ;;  %v1492_v49 = vadd.f32 %v1491_v37, %v3198_v62 }
 0x1da   :  { %v1493_v41 = vpop.f32.mrf.mxu0  ;;  %v1606_v42 = vpop.f32.mrf.mxu1 }
 0x1db   :  { %v1652_v47 = vmax.f32 %v1601_v39, 0.0  ;;  %v1494_v48 = vadd.f32 %v1493_v41, %v3194_v61  ;;  %v2430_v55 = vpack.c.bf16 %v1651_v40, %v1649_v53  ;;  %v1605_v63 = vadd.f32 %v1604_v38, %v1492_v49 }
 0x1dc   :  { %v1495_v54 = vpop.f32.mrf.mxu0  ;;  %v1608_v51 = vpop.f32.mrf.mxu1 }
 0x1dd   :  { %v2431_v52 = vpack.c.bf16 %v1652_v47, %v1650_v45  ;;  %v1496_v50 = vadd.f32 %v1495_v54, %v3198_v62  ;;  %v1607_v58 = vadd.f32 %v1606_v42, %v1494_v48  ;;  %v1653_v10 = vmax.f32 %v1605_v63, 0.0  ;;  %v3235_v54 = vld [vmem:[%s3307_s6] ss:$0 sm:$0xff] }
 0x1de   :  { %v1497_v56 = vpop.f32.mrf.mxu0  ;;  %v1610_v57 = vpop.f32.mrf.mxu1 }
 0x1df   :  { %v1609_v59 = vadd.f32 %v1608_v51, %v1496_v50  ;;  %v1498_v60 = vadd.f32 %v1497_v56, %v3194_v61  ;;  %2072 = vmatprep.mubr.bf16.mxu1 %v2431_v52  ;;  %v1654_v7 = vmax.f32 %v1607_v58, 0.0 }
 0x1e0   :  { %v1501_v0 = vpop.f32.mrf.mxu0  ;;  %v1614_v2 = vpop.f32.mrf.mxu1  ;;  %2073 = vmatmul.mubr.bf16.vlgmr.msra.gmra.mxu1 %v2430_v55 }
 0x1e1   :  { %v1611_v3 = vadd.f32 %v1610_v57, %v1498_v60  ;;  %v1655_v4 = vmax.f32 %v1609_v59, 0.0  ;;  %v1502_v44 = vadd.f32 %v1501_v0, %v3198_v62 }
 0x1e2   :  { %v1503_v5 = vpop.f32.mrf.mxu0  ;;  %v1616_v6 = vpop.f32.mrf.mxu1 }
 0x1e3   :  { %v1656_v8 = vmax.f32 %v1611_v3, 0.0  ;;  %v1504_v9 = vadd.f32 %v1503_v5, %v3194_v61  ;;  %v2432_v13 = vpack.c.bf16 %v1655_v4, %v1653_v10  ;;  %v1615_v19 = vadd.f32 %v1614_v2, %v1502_v44 }
 0x1e4   :  { %v1505_v11 = vpop.f32.mrf.mxu0  ;;  %v1618_v43 = vpop.f32.mrf.mxu1 }
 0x1e5   :  { %v2433_v46 = vpack.c.bf16 %v1656_v8, %v1654_v7  ;;  %v1506_v12 = vadd.f32 %v1505_v11, %v3198_v62  ;;  %v1617_v16 = vadd.f32 %v1616_v6, %v1504_v9  ;;  %v1657_v29 = vmax.f32 %v1615_v19, 0.0 }
 0x1e6   :  { %v1507_v14 = vpop.f32.mrf.mxu0  ;;  %v1620_v15 = vpop.f32.mrf.mxu1 }
 0x1e7   :  { %v1619_v17 = vadd.f32 %v1618_v43, %v1506_v12  ;;  %v1508_v18 = vadd.f32 %v1507_v14, %v3194_v61  ;;  %2080 = vmatprep.mubr.bf16.mxu1 %v2433_v46  ;;  %v1658_v26 = vmax.f32 %v1617_v16, 0.0 }
 0x1e8   :  { %v1511_v20 = vpop.f32.mrf.mxu0  ;;  %v1624_v21 = vpop.f32.mrf.mxu1  ;;  %2081 = vmatmul.mubr.bf16.gmra.mxu1 %v2432_v13 }
 0x1e9   :  { %v1621_v22 = vadd.f32 %v1620_v15, %v1508_v18  ;;  %v1659_v23 = vmax.f32 %v1619_v17, 0.0  ;;  %v1512_v30 = vadd.f32 %v1511_v20, %v3198_v62 }
 0x1ea   :  { %v1513_v24 = vpop.f32.mrf.mxu0  ;;  %v1626_v25 = vpop.f32.mrf.mxu1 }
 0x1eb   :  { %v1660_v27 = vmax.f32 %v1621_v22, 0.0  ;;  %v1514_v28 = vadd.f32 %v1513_v24, %v3194_v61  ;;  %v2434_v34 = vpack.c.bf16 %v1659_v23, %v1657_v29  ;;  %v1625_v39 = vadd.f32 %v1624_v21, %v1512_v30 }
 0x1ec   :  { %v1515_v31 = vpop.f32.mrf.mxu0  ;;  %v1628_v1 = vpop.f32.mrf.mxu1 }
 0x1ed   :  { %v2435_v32 = vpack.c.bf16 %v1660_v27, %v1658_v26  ;;  %v1516_v33 = vadd.f32 %v1515_v31, %v3198_v62  ;;  %v1627_v36 = vadd.f32 %v1626_v25, %v1514_v28  ;;  %v1661_v48 = vmax.f32 %v1625_v39, 0.0 }
 0x1ee   :  { %v1517_v35 = vpop.f32.mrf.mxu0  ;;  %v1630_v40 = vpop.f32.mrf.mxu1 }
 0x1ef   :  { %v1629_v37 = vadd.f32 %v1628_v1, %v1516_v33  ;;  %v1518_v38 = vadd.f32 %v1517_v35, %v3194_v61  ;;  %2088 = vmatprep.mubr.bf16.mxu1 %v2435_v32  ;;  %v1662_v45 = vmax.f32 %v1627_v36, 0.0 }
 0x1f0   :  { %2089 = vmatmul.mubr.bf16.gmra.mxu1 %v2434_v34 }
 0x1f1   :  { %v1631_v41 = vadd.f32 %v1630_v40, %v1518_v38  ;;  %v1663_v42 = vmax.f32 %v1629_v37, 0.0 }
 0x1f3   :  { %v1664_v47 = vmax.f32 %v1631_v41, 0.0  ;;  %v2436_v49 = vpack.c.bf16 %v1663_v42, %v1661_v48 }
 0x1f5   :  { %v2437_v53 = vpack.c.bf16 %v1664_v47, %v1662_v45 }
 0x1f7   :  { %2096 = vmatprep.mubr.bf16.mxu1 %v2437_v53 }
 0x1f8   :  { %2097 = vmatmul.mubr.bf16.gmra.mxu1 %v2436_v49 }
 0x280   :  { %v2454_v62 = vpop.f32.mrf.mxu0 }
 0x282   :  { %v2455_v61 = vpop.f32.mrf.mxu0 }
 0x283   :  { %v2456_v51 = vadd.f32 %v2455_v61, %v2454_v62 }
 0x284   :  { %v2457_v52 = vpop.f32.mrf.mxu0 }
 0x285   :  { %v2043_v50 = vadd.f32 %v2456_v51, %v3235_v54 }
 0x286   :  { %v2458_v55 = vpop.f32.mrf.mxu0 }
 0x287   :  { %2105 = vst [vmem:[%s3308_s7] sm:$0xff] %v2043_v50  ;;  %v2459_v56 = vadd.f32 %v2458_v55, %v2457_v52 }
 0x288   :  { %v2460_v57 = vpop.f32.mrf.mxu0 }
 0x289   :  { %v2046_v58 = vadd.f32 %v2459_v56, %v3235_v54 }
 0x28a   :  { %v2461_v59 = vpop.f32.mrf.mxu0 }
 0x28b   :  { %2106 = vst [vmem:[%s3308_s7 + $0x8] sm:$0xff] %v2046_v58  ;;  %v2462_v60 = vadd.f32 %v2461_v59, %v2460_v57 }
 0x28c   :  { %v2463_v63 = vpop.f32.mrf.mxu0 }
 0x28d   :  { %v2051_v0 = vadd.f32 %v2462_v60, %v3235_v54 }
 0x28e   :  { %v2464_v2 = vpop.f32.mrf.mxu0 }
 0x28f   :  { %2107 = vst [vmem:[%s3308_s7 + $0x10] sm:$0xff] %v2051_v0  ;;  %v2465_v3 = vadd.f32 %v2464_v2, %v2463_v63 }
 0x290   :  { %v2466_v4 = vpop.f32.mrf.mxu0 }
 0x291   :  { %v2054_v5 = vadd.f32 %v2465_v3, %v3235_v54 }
 0x292   :  { %v2467_v6 = vpop.f32.mrf.mxu0 }
 0x293   :  { %2108 = vst [vmem:[%s3308_s7 + $0x18] sm:$0xff] %v2054_v5  ;;  %v2468_v7 = vadd.f32 %v2467_v6, %v2466_v4 }
 0x294   :  { %v2469_v8 = vpop.f32.mrf.mxu0 }
 0x295   :  { %v2059_v9 = vadd.f32 %v2468_v7, %v3235_v54 }
 0x296   :  { %v2470_v10 = vpop.f32.mrf.mxu0 }
 0x297   :  { %2109 = vst [vmem:[%s3308_s7 + $0x20] sm:$0xff] %v2059_v9  ;;  %v2471_v44 = vadd.f32 %v2470_v10, %v2469_v8 }
 0x298   :  { %v2472_v11 = vpop.f32.mrf.mxu0 }
 0x299   :  { %v2062_v43 = vadd.f32 %v2471_v44, %v3235_v54 }
 0x29a   :  { %v2473_v46 = vpop.f32.mrf.mxu0 }
 0x29b   :  { %2110 = vst [vmem:[%s3308_s7 + $0x28] sm:$0xff] %v2062_v43  ;;  %v2474_v12 = vadd.f32 %v2473_v46, %v2472_v11 }
 0x29c   :  { %v2475_v13 = vpop.f32.mrf.mxu0 }
 0x29d   :  { %v2067_v14 = vadd.f32 %v2474_v12, %v3235_v54 }
 0x29e   :  { %v2476_v15 = vpop.f32.mrf.mxu0 }
 0x29f   :  { %2111 = vst [vmem:[%s3308_s7 + $0x30] sm:$0xff] %v2067_v14  ;;  %v2477_v16 = vadd.f32 %v2476_v15, %v2475_v13 }
 0x2a0   :  { %v2478_v17 = vpop.f32.mrf.mxu1 }
 0x2a1   :  { %v2070_v18 = vadd.f32 %v2477_v16, %v3235_v54 }
 0x2a2   :  { %v2479_v19 = vpop.f32.mrf.mxu1 }
 0x2a3   :  { %2112 = vst [vmem:[%s3308_s7 + $0x38] sm:$0xff] %v2070_v18  ;;  %v2480_v20 = vadd.f32 %v2479_v19, %v2478_v17 }
 0x2a4   :  { %v2481_v21 = vpop.f32.mrf.mxu1 }
 0x2a5   :  { %v2075_v22 = vadd.f32 %v2480_v20, %v3235_v54 }
 0x2a6   :  { %v2482_v23 = vpop.f32.mrf.mxu1 }
 0x2a7   :  { %2113 = vst [vmem:[%s3308_s7 + $0x40] sm:$0xff] %v2075_v22  ;;  %v2483_v24 = vadd.f32 %v2482_v23, %v2481_v21 }
 0x2a8   :  { %v2484_v25 = vpop.f32.mrf.mxu1 }
 0x2a9   :  { %v2078_v26 = vadd.f32 %v2483_v24, %v3235_v54 }
 0x2aa   :  { %v2485_v27 = vpop.f32.mrf.mxu1 }
 0x2ab   :  { %2114 = vst [vmem:[%s3308_s7 + $0x48] sm:$0xff] %v2078_v26  ;;  %v2486_v28 = vadd.f32 %v2485_v27, %v2484_v25 }
 0x2ac   :  { %v2487_v29 = vpop.f32.mrf.mxu1 }
 0x2ad   :  { %v2083_v30 = vadd.f32 %v2486_v28, %v3235_v54 }
 0x2ae   :  { %v2488_v31 = vpop.f32.mrf.mxu1 }
 0x2af   :  { %2115 = vst [vmem:[%s3308_s7 + $0x50] sm:$0xff] %v2083_v30  ;;  %v2489_v1 = vadd.f32 %v2488_v31, %v2487_v29 }
 0x2b0   :  { %v2490_v32 = vpop.f32.mrf.mxu1 }
 0x2b1   :  { %v2086_v33 = vadd.f32 %v2489_v1, %v3235_v54 }
 0x2b2   :  { %v2491_v34 = vpop.f32.mrf.mxu1 }
 0x2b3   :  { %2116 = vst [vmem:[%s3308_s7 + $0x58] sm:$0xff] %v2086_v33  ;;  %v2492_v35 = vadd.f32 %v2491_v34, %v2490_v32 }
 0x2b4   :  { %v2493_v36 = vpop.f32.mrf.mxu1 }
 0x2b5   :  { %v2091_v37 = vadd.f32 %v2492_v35, %v3235_v54 }
 0x2b6   :  { %v2494_v38 = vpop.f32.mrf.mxu1 }
 0x2b7   :  { %2117 = vst [vmem:[%s3308_s7 + $0x60] sm:$0xff] %v2091_v37  ;;  %v2495_v39 = vadd.f32 %v2494_v38, %v2493_v36 }
 0x2b8   :  { %v2496_v40 = vpop.f32.mrf.mxu1 }
 0x2b9   :  { %v2094_v41 = vadd.f32 %v2495_v39, %v3235_v54 }
 0x2ba   :  { %v2497_v42 = vpop.f32.mrf.mxu1 }
 0x2bb   :  { %2118 = vst [vmem:[%s3308_s7 + $0x68] sm:$0xff] %v2094_v41  ;;  %v2498_v45 = vadd.f32 %v2497_v42, %v2496_v40 }
 0x2bc   :  { %v2499_v47 = vpop.f32.mrf.mxu1 }
 0x2bd   :  { %v2099_v48 = vadd.f32 %v2498_v45, %v3235_v54 }
 0x2be   :  { %v2500_v53 = vpop.f32.mrf.mxu1 }
 0x2bf   :  { %2119 = vst [vmem:[%s3308_s7 + $0x70] sm:$0xff] %v2099_v48  ;;  %v2501_v49 = vadd.f32 %v2500_v53, %v2499_v47 }
 0x2c1   :  { %v2102_v62 = vadd.f32 %v2501_v49, %v3235_v54 }
 0x2c3   :  { %2120 = vst [vmem:[%s3308_s7 + $0x78] sm:$0xff] %v2102_v62 }

</bundles_post_ra>
